<compile_context>
chip_gen: v5e
topology: v5e:2x2
jax: 0.10.0
libtpu: 0.0.40
codegen_flags: <defaults>
</compile_context>

<pallas_src>
import jax
import jax.numpy as jnp
from jax.experimental import pallas as pl
from jax.experimental.pallas import tpu as pltpu


def _msfd_kernel(x_ref, plin_ref, p4_ref, out_ref):
    B, L = x_ref.shape
    C4 = out_ref.shape[1]          # 4 * C
    C = C4 // 4
    C3 = 3 * C

    x = x_ref[...]                 # (B, L) f32
    plin = plin_ref[...]           # (4, 3C): rows = left-tap, center-tap, right-tap, bias
    p4 = p4_ref[...]               # (2, C):  rows = w4, b4 (1x1 conv + ReLU branch)
    inv_l = jnp.float32(1.0 / L)

    # ---- dilated convs collapsed (assumes PyTorch default zero padding) ----
    # sum_t x_pad[t-d] = S - (last d elems),  sum_t x_pad[t+d] = S - (first d elems)
    s = jnp.sum(x, axis=1, keepdims=True)            # (B, 1)
    head = x[:, 0:3]                                 # (B, 3)
    tail = x[:, L - 3:L]                             # (B, 3)
    h1 = head[:, 0:1]
    h2 = h1 + head[:, 1:2]
    h3 = h2 + head[:, 2:3]
    t1 = tail[:, 2:3]
    t2 = t1 + tail[:, 1:2]
    t3 = t2 + tail[:, 0:1]

    # Lane id selects which dilation group each of the 3C linear columns is in.
    lane = jax.lax.broadcasted_iota(jnp.int32, (B, C3), 1)
    left = jnp.where(lane < C, s - t1, jnp.where(lane < 2 * C, s - t2, s - t3))
    right = jnp.where(lane < C, s - h1, jnp.where(lane < 2 * C, s - h2, s - h3))

    lin = (left * plin[0:1, :] + s * plin[1:2, :] + right * plin[2:3, :]) * inv_l \
        + plin[3:4, :]                               # (B, 3C)

    # ---- extra1: 1x1 conv + ReLU (ReLU before pooling -> not collapsible) ----
    # Vectorized over channels: (B, C, L) fills all 8 sublanes of each vreg and
    # needs a single lane reduce, instead of C separate passes.
    w4 = p4[0, :][None, :, None]                     # (1, C, 1)
    b4 = p4[1, :][None, :, None]                     # (1, C, 1)
    y4 = jnp.maximum(x[:, None, :] * w4 + b4, jnp.float32(0.0))   # (B, C, L)
    m4 = jnp.sum(y4, axis=-1) * inv_l                              # (B, C)

    # Single full-tile store of the (B, 4C) output (PyTorch channel order:
    # [dilated1 | dilated2 | dilated3 | extra1]).
    out_ref[...] = jnp.concatenate([lin, m4], axis=1)


def _pack_linear(params):
    """Pack the three k=3 conv weights/biases into one (4, 3C) f32 tile.

    Row 0/1/2 = left/center/right tap weights per output column, row 3 = bias.
    """
    rows = []
    for k in range(3):
        rows.append(jnp.concatenate(
            [params["w1"][:, k], params["w2"][:, k], params["w3"][:, k]]))
    rows.append(jnp.concatenate([params["b1"], params["b2"], params["b3"]]))
    return jnp.stack(rows, axis=0).astype(jnp.float32)        # (4, 3C)


def multi_scale_fusion_dilated(x, params):
    """x: (B, L) f32 -> (B, 4*C) f32 where C = num_bottleneck // groups."""
    B, L = x.shape
    C = params["w4"].shape[0]
    assert L > 3, "collapsed edge-correction form assumes L > max dilation (3)"

    plin = _pack_linear(params)                                        # (4, 3C)
    p4 = jnp.stack([params["w4"], params["b4"]], axis=0).astype(jnp.float32)  # (2, C)

    vmem = pl.BlockSpec(memory_space=pltpu.MemorySpace.VMEM)
    # TODO(synk): for large B, add a grid over B (rows a multiple of 8, block
    # sized for v7x's 64 MiB VMEM / v5e's 16 MiB scoped default) with
    # dimension_semantics=("parallel",), and keep x in bf16 on v6e/v7x to halve
    # HBM traffic — this kernel is purely memory-bound on x at scale.
    return pl.pallas_call(
        _msfd_kernel,
        out_shape=jax.ShapeDtypeStruct((B, 4 * C), jnp.float32),
        in_specs=[vmem, vmem, vmem],
        out_specs=vmem,
    )(x.astype(jnp.float32), plin, p4)


def init_params(key, num_bottleneck=32, groups=4):
    """Deterministic init mirroring nn.Conv1d defaults (uniform ±1/sqrt(fan_in))."""
    C = num_bottleneck // groups
    ks = jax.random.split(key, 8)
    bd = 1.0 / jnp.sqrt(3.0)                         # fan_in = 1*3 for k=3 convs
    return {
        "w1": jax.random.uniform(ks[0], (C, 3), jnp.float32, -bd, bd),
        "b1": jax.random.uniform(ks[1], (C,), jnp.float32, -bd, bd),
        "w2": jax.random.uniform(ks[2], (C, 3), jnp.float32, -bd, bd),
        "b2": jax.random.uniform(ks[3], (C,), jnp.float32, -bd, bd),
        "w3": jax.random.uniform(ks[4], (C, 3), jnp.float32, -bd, bd),
        "b3": jax.random.uniform(ks[5], (C,), jnp.float32, -bd, bd),
        "w4": jax.random.uniform(ks[6], (C,), jnp.float32, -1.0, 1.0),  # fan_in = 1
        "b4": jax.random.uniform(ks[7], (C,), jnp.float32, -1.0, 1.0),
    }


def reference(x, params):
    """Pure-JAX reference of the PyTorch forward (for verification)."""
    B, L = x.shape

    def shift(arr, s):
        if s == 0:
            return arr
        z = jnp.zeros((B, abs(s)), arr.dtype)
        if s > 0:
            return jnp.concatenate([arr[:, s:], z], axis=1)
        return jnp.concatenate([z, arr[:, :s]], axis=1)

    outs = []
    for (wk, bk, d) in (("w1", "b1", 1), ("w2", "b2", 2), ("w3", "b3", 3)):
        w, bias = params[wk], params[bk]
        y = (shift(x, -d)[:, None, :] * w[:, 0][None, :, None]
             + x[:, None, :] * w[:, 1][None, :, None]
             + shift(x, d)[:, None, :] * w[:, 2][None, :, None]
             + bias[None, :, None])
        outs.append(jnp.mean(y, axis=-1))
    y4 = jnp.maximum(x[:, None, :] * params["w4"][None, :, None]
                     + params["b4"][None, :, None], 0.0)
    outs.append(jnp.mean(y4, axis=-1))
    return jnp.concatenate(outs, axis=1)


if __name__ == "__main__":
    B, input_dim, num_bottleneck, groups = 2, 128, 32, 4
    key = jax.random.PRNGKey(0)
    kx, kp = jax.random.split(key)
    x = jax.random.normal(kx, (B, input_dim), dtype=jnp.float32)
    params = init_params(kp, num_bottleneck, groups)

    out = multi_scale_fusion_dilated(x, params)
    out = jax.block_until_ready(out)

    ref = reference(x, params)
    assert out.shape == (B, num_bottleneck), out.shape
    assert out.dtype == jnp.float32
    assert jnp.allclose(out, ref, rtol=1e-4, atol=1e-5), (out, ref)
    print("KERNEL_OK")
</pallas_src>

<mosaic_0001>
module attributes {stable_mosaic.version = 11 : i64} {
  func.func @_msfd_kernel(%arg0: memref<2x128xf32, #tpu.memory_space<vmem>>, %arg1: memref<4x24xf32, #tpu.memory_space<vmem>>, %arg2: memref<2x8xf32, #tpu.memory_space<vmem>>, %arg3: memref<2x32xf32, #tpu.memory_space<vmem>>) attributes {dimension_semantics = [], scalar_prefetch = 0 : i64, scratch_operands = 0 : i64, tpu.core_type = #tpu.core_type<tc>} {
    %c0 = arith.constant 0 : index
    %c0_0 = arith.constant 0 : index
    %0 = vector.load %arg0[%c0, %c0_0] : memref<2x128xf32, #tpu.memory_space<vmem>>, vector<2x128xf32>
    %c0_1 = arith.constant 0 : index
    %c0_2 = arith.constant 0 : index
    %1 = vector.load %arg1[%c0_1, %c0_2] : memref<4x24xf32, #tpu.memory_space<vmem>>, vector<4x24xf32>
    %c0_3 = arith.constant 0 : index
    %c0_4 = arith.constant 0 : index
    %2 = vector.load %arg2[%c0_3, %c0_4] : memref<2x8xf32, #tpu.memory_space<vmem>>, vector<2x8xf32>
    %cst = arith.constant dense<0.000000e+00> : vector<2xf32>
    %3 = vector.multi_reduction <add>, %0, %cst [1] : vector<2x128xf32> to vector<2xf32>
    %4 = vector.shape_cast %3 : vector<2xf32> to vector<2x1xf32>
    %5 = vector.extract_strided_slice %0 {offsets = [0, 0], sizes = [2, 3], strides = [1, 1]} : vector<2x128xf32> to vector<2x3xf32>
    %6 = vector.extract_strided_slice %0 {offsets = [0, 125], sizes = [2, 3], strides = [1, 1]} : vector<2x128xf32> to vector<2x3xf32>
    %7 = vector.extract_strided_slice %5 {offsets = [0, 0], sizes = [2, 1], strides = [1, 1]} : vector<2x3xf32> to vector<2x1xf32>
    %8 = vector.extract_strided_slice %5 {offsets = [0, 1], sizes = [2, 1], strides = [1, 1]} : vector<2x3xf32> to vector<2x1xf32>
    %9 = arith.addf %7, %8 : vector<2x1xf32>
    %10 = vector.extract_strided_slice %5 {offsets = [0, 2], sizes = [2, 1], strides = [1, 1]} : vector<2x3xf32> to vector<2x1xf32>
    %11 = arith.addf %9, %10 : vector<2x1xf32>
    %12 = vector.extract_strided_slice %6 {offsets = [0, 2], sizes = [2, 1], strides = [1, 1]} : vector<2x3xf32> to vector<2x1xf32>
    %13 = vector.extract_strided_slice %6 {offsets = [0, 1], sizes = [2, 1], strides = [1, 1]} : vector<2x3xf32> to vector<2x1xf32>
    %14 = arith.addf %12, %13 : vector<2x1xf32>
    %15 = vector.extract_strided_slice %6 {offsets = [0, 0], sizes = [2, 1], strides = [1, 1]} : vector<2x3xf32> to vector<2x1xf32>
    %16 = arith.addf %14, %15 : vector<2x1xf32>
    %17 = tpu.iota {dimensions = array<i32: 1>} : vector<2x24xi32>
    %c8_i32 = arith.constant 8 : i32
    %18 = vector.broadcast %c8_i32 : i32 to vector<2x24xi32>
    %19 = arith.cmpi slt, %17, %18 : vector<2x24xi32>
    %20 = arith.subf %4, %12 : vector<2x1xf32>
    %c16_i32 = arith.constant 16 : i32
    %21 = vector.broadcast %c16_i32 : i32 to vector<2x24xi32>
    %22 = arith.cmpi slt, %17, %21 : vector<2x24xi32>
    %23 = arith.subf %4, %14 : vector<2x1xf32>
    %24 = arith.subf %4, %16 : vector<2x1xf32>
    %25 = vector.shape_cast %23 : vector<2x1xf32> to vector<2x1xf32>
    %26 = vector.broadcast %25 : vector<2x1xf32> to vector<2x24xf32>
    %27 = vector.shape_cast %24 : vector<2x1xf32> to vector<2x1xf32>
    %28 = vector.broadcast %27 : vector<2x1xf32> to vector<2x24xf32>
    %29 = arith.select %22, %26, %28 : vector<2x24xi1>, vector<2x24xf32>
    %30 = vector.shape_cast %20 : vector<2x1xf32> to vector<2x1xf32>
    %31 = vector.broadcast %30 : vector<2x1xf32> to vector<2x24xf32>
    %32 = arith.select %19, %31, %29 : vector<2x24xi1>, vector<2x24xf32>
    %c8_i32_5 = arith.constant 8 : i32
    %33 = vector.broadcast %c8_i32_5 : i32 to vector<2x24xi32>
    %34 = arith.cmpi slt, %17, %33 : vector<2x24xi32>
    %35 = arith.subf %4, %7 : vector<2x1xf32>
    %c16_i32_6 = arith.constant 16 : i32
    %36 = vector.broadcast %c16_i32_6 : i32 to vector<2x24xi32>
    %37 = arith.cmpi slt, %17, %36 : vector<2x24xi32>
    %38 = arith.subf %4, %9 : vector<2x1xf32>
    %39 = arith.subf %4, %11 : vector<2x1xf32>
    %40 = vector.shape_cast %38 : vector<2x1xf32> to vector<2x1xf32>
    %41 = vector.broadcast %40 : vector<2x1xf32> to vector<2x24xf32>
    %42 = vector.shape_cast %39 : vector<2x1xf32> to vector<2x1xf32>
    %43 = vector.broadcast %42 : vector<2x1xf32> to vector<2x24xf32>
    %44 = arith.select %37, %41, %43 : vector<2x24xi1>, vector<2x24xf32>
    %45 = vector.shape_cast %35 : vector<2x1xf32> to vector<2x1xf32>
    %46 = vector.broadcast %45 : vector<2x1xf32> to vector<2x24xf32>
    %47 = arith.select %34, %46, %44 : vector<2x24xi1>, vector<2x24xf32>
    %48 = vector.extract_strided_slice %1 {offsets = [0, 0], sizes = [1, 24], strides = [1, 1]} : vector<4x24xf32> to vector<1x24xf32>
    %49 = vector.broadcast %48 : vector<1x24xf32> to vector<2x24xf32>
    %50 = arith.mulf %32, %49 : vector<2x24xf32>
    %51 = vector.extract_strided_slice %1 {offsets = [1, 0], sizes = [1, 24], strides = [1, 1]} : vector<4x24xf32> to vector<1x24xf32>
    %52 = vector.broadcast %4 : vector<2x1xf32> to vector<2x24xf32>
    %53 = vector.broadcast %51 : vector<1x24xf32> to vector<2x24xf32>
    %54 = arith.mulf %52, %53 : vector<2x24xf32>
    %55 = arith.addf %50, %54 : vector<2x24xf32>
    %56 = vector.extract_strided_slice %1 {offsets = [2, 0], sizes = [1, 24], strides = [1, 1]} : vector<4x24xf32> to vector<1x24xf32>
    %57 = vector.broadcast %56 : vector<1x24xf32> to vector<2x24xf32>
    %58 = arith.mulf %47, %57 : vector<2x24xf32>
    %59 = arith.addf %55, %58 : vector<2x24xf32>
    %cst_7 = arith.constant 7.812500e-03 : f32
    %60 = vector.broadcast %cst_7 : f32 to vector<2x24xf32>
    %61 = arith.mulf %59, %60 : vector<2x24xf32>
    %62 = vector.extract_strided_slice %1 {offsets = [3, 0], sizes = [1, 24], strides = [1, 1]} : vector<4x24xf32> to vector<1x24xf32>
    %63 = vector.broadcast %62 : vector<1x24xf32> to vector<2x24xf32>
    %64 = arith.addf %61, %63 : vector<2x24xf32>
    %65 = vector.extract_strided_slice %2 {offsets = [0, 0], sizes = [1, 8], strides = [1, 1]} : vector<2x8xf32> to vector<1x8xf32>
    %66 = vector.shape_cast %65 : vector<1x8xf32> to vector<8xf32>
    %67 = vector.shape_cast %66 : vector<8xf32> to vector<1x8x1xf32>
    %68 = vector.extract_strided_slice %2 {offsets = [1, 0], sizes = [1, 8], strides = [1, 1]} : vector<2x8xf32> to vector<1x8xf32>
    %69 = vector.shape_cast %68 : vector<1x8xf32> to vector<8xf32>
    %70 = vector.shape_cast %69 : vector<8xf32> to vector<1x8x1xf32>
    %71 = vector.shape_cast %0 : vector<2x128xf32> to vector<2x1x128xf32>
    %72 = vector.broadcast %71 : vector<2x1x128xf32> to vector<2x8x128xf32>
    %73 = vector.broadcast %67 : vector<1x8x1xf32> to vector<2x8x128xf32>
    %74 = arith.mulf %72, %73 : vector<2x8x128xf32>
    %75 = vector.broadcast %70 : vector<1x8x1xf32> to vector<2x8x128xf32>
    %76 = arith.addf %74, %75 : vector<2x8x128xf32>
    %cst_8 = arith.constant 0.000000e+00 : f32
    %77 = vector.broadcast %cst_8 : f32 to vector<2x8x128xf32>
    %78 = arith.maximumf %76, %77 : vector<2x8x128xf32>
    %cst_9 = arith.constant dense<0.000000e+00> : vector<2x8xf32>
    %79 = vector.multi_reduction <add>, %78, %cst_9 [2] : vector<2x8x128xf32> to vector<2x8xf32>
    %cst_10 = arith.constant 7.812500e-03 : f32
    %80 = vector.broadcast %cst_10 : f32 to vector<2x8xf32>
    %81 = arith.mulf %79, %80 : vector<2x8xf32>
    %82 = tpu.concatenate %64, %81 in 1 : vector<2x24xf32>, vector<2x8xf32> -> vector<2x32xf32>
    %c0_11 = arith.constant 0 : index
    %c0_12 = arith.constant 0 : index
    %83 = vector.load %arg3[%c0_11, %c0_12] : memref<2x32xf32, #tpu.memory_space<vmem>>, vector<2x32xf32>
    tpu.vector_store %arg3[%c0_11, %c0_12], %82 {strides = array<i32>} : memref<2x32xf32, #tpu.memory_space<vmem>>, vector<2x32xf32>,
    return
  }
}

</mosaic_0001>

<bundles_post_ra>
// kernel: tpu_custom_call.1
= control target key start
LH: loop header
LB: loop body
LE: loop exit
PB: predicated region body
PF: predicated region fallthrough
CT: control target
= control target key end

     0   :  { %8 = vsyncpa [#allocation3], 0  ;;  %s357_s0 = inlined_call_operand.hbm [shape: f32[2,128], index: 0, kind: input, shape index: {}]   ;;  %s358_s1 = inlined_call_operand.hbm [shape: f32[4,24], index: 1, kind: input, shape index: {}]   ;;  %s359_s2 = inlined_call_operand.hbm [shape: f32[2,8], index: 2, kind: input, shape index: {}]   ;;  %s360_s3 = inlined_call_operand.hbm [shape: f32[2,32], index: 3, kind: output, shape index: {}]  }
   0x1   :  { %9 = vsyncpa [#allocation6], 0  ;;  %s27_s14 = sshll.u32 %s358_s1, 4  ;;  %s28_s14 = int_to_ptr.hbm [resolvable:$true] %s27_s14 }
   0x2   :  { %10 = vsyncpa [#allocation4], 0  ;;  %s315_s15 = smov [#allocation5]   ;;  %s16_s19 = sshll.u32 %s357_s0, 4  ;;  %s17_s19 = int_to_ptr.hbm [resolvable:$true] %s16_s19 }
   0x3   :  { %s29_s16 = sshll.u32 %s315_s15, 4  ;;  %s316_s20 = smov [#allocation2]   ;;  %s30_s16 = int_to_ptr.vmem [resolvable:$true] %s29_s16 }
   0x4   :  { %32 = dma.hbm_to_vmem [thread:$0]  %s28_s14, 64, %s30_s16, [#allocation6]  }
   0x5   :  { %s18_s21 = sshll.u32 %s316_s20, 4  ;;  %s38_s24 = sshll.u32 %s359_s2, 4  ;;  %s19_s21 = int_to_ptr.vmem [resolvable:$true] %s18_s21  ;;  %s39_s24 = int_to_ptr.hbm [resolvable:$true] %s38_s24 }
   0x6   :  { %21 = dma.hbm_to_vmem [thread:$0]  %s17_s19, 32, %s19_s21, [#allocation3]  }
   0x7   :  { %s317_s1 = smov [#allocation7]  }
   0x8   :  { %s40_s25 = sshll.u32 %s317_s1, 4  ;;  %s41_s25 = int_to_ptr.vmem [resolvable:$true] %s40_s25 }
   0x9   :  { %43 = dma.hbm_to_vmem [thread:$0]  %s39_s24, 32, %s41_s25, [#allocation6]  }
   0xa   :  { %309 = dma.done.wait [#allocation3], 32  }
   0xb   :  { %310 = vsyncadd [#allocation3], 4294967264 }
   0xc   :  { %311 = dma.done.wait [#allocation6], 96  }
   0xd   :  { %312 = vsyncadd [#allocation6], 4294967200  ;;  %v56_v0 = vld [vmem:[#allocation2] sm:$0x3]  ;;  %s318_s0 = smov 2   ;;  %s319_s26 = smov 1   ;;  %v80_v1 = vlaneseq }
   0xe   :  { %76 = vrot.lane.b32.xlu1 %v56_v0, %s318_s0  ;;  %72 = vrot.lane.b32.xlu0 %v56_v0, %s319_s26  ;;  %s320_s27 = smov 126   ;;  %s321_s28 = smov 127   ;;  %v58_v3 = vld [vmem:[#allocation7] sm:$0x3]  ;;  %vm59_vm0 = vcmask 1041408   ;;  %v322_v7 = vmov 127  }
   0xf   :  { %68 = vrot.lane.b32.xlu2 %v56_v0, %s320_s27  ;;  %v135_v2 = vshrl.u32 %v80_v1, 7  ;;  %v140_v4 = vperm.slane %v58_v3, 1  ;;  %v60_v5 = vsel %vm59_vm0, %v56_v0, 0.0  ;;  %v133_v6 = vperm.slane %v58_v3, 0  ;;  %v57_v39 = vld [vmem:[#allocation5] sm:$0xf] }
  0x10   :  { %v323_v17 = vmov 0   ;;  %v147_v19 = vrot.slane %v56_v0, 1  ;;  %v148_v30 = vperm.slane %v56_v0, 0  ;;  %v81_v38 = vand.u32 127, %v80_v1  ;;  %s324_s2 = smov [#allocation8]   ;;  %s183_s5 = sshll.u32 %s360_s3, 4  ;;  %s184_s5 = int_to_ptr.hbm [resolvable:$true] %s183_s5 }
  0x11   :  { %205 = vset.pattern.permute.xlu0 %v135_v2  ;;  %204 = vset.pattern.permute.xlu2 %v135_v2  ;;  %v122_v42 = vperm.slane %v57_v39, 0  ;;  %v124_v45 = vperm.slane %v57_v39, 1  ;;  %v127_v47 = vperm.slane %v57_v39, 2  ;;  %v131_v57 = vperm.slane %v57_v39, 3  ;;  %s181_s29 = sshll.u32 %s324_s2, 4  ;;  %s182_s29 = int_to_ptr.vmem [resolvable:$true] %s181_s29 }
  0x12   :  { %v149_v21 = vperm.slane %v147_v19, 0  ;;  %vm84_vm1 = vcmp.lt.s32.totalorder %v81_v38, 16  ;;  %vm82_vm2 = vcmp.lt.s32.totalorder %v81_v38, 8  ;;  %v166_v55 = vadd.s32 4294967272, %v81_v38 }
  0x13   :  { %vm169_vm3 = vcmask 1041409   ;;  %vm172_vm4 = vcmask 195584   ;;  %vm174_vm5 = vcmask 254976  }
  0x16   :  { %64 = vrot.lane.b32.xlu0 %v56_v0, %s321_s28 }
  0x19   :  { %138 = vperm.xlu2 %204, %v133_v6  }
  0x1e   :  { %145 = vperm.xlu0 %205, %v140_v4  }
  0x21   :  { %206 = vset.pattern.permute.xlu2 %v322_v7 }
  0x26   :  { %207 = vset.pattern.permute.xlu0 %v322_v7 }
  0x38   :  { %61 = vadd.xlane.f32.xlu1 %v60_v5 }
  0x69   :  { %v69_v18 = vpop.permute.xlu2 %68 }
  0x73   :  { %v139_v23 = vpop.permute.xlu2 %138 }
  0x74   :  { %v153_v25 = vmul.f32 %v149_v21, %v139_v23  ;;  %v152_v31 = vmul.f32 %v148_v30, %v139_v23 }
  0x80   :  { %v77_v8 = vpop.permute.xlu1 %76  ;;  %v73_v9 = vpop.permute.xlu0 %72 }
  0x81   :  { %v75_v10 = vadd.f32 %v73_v9, %v56_v0 }
  0x83   :  { %v79_v20 = vadd.f32 %v77_v8, %v75_v10 }
  0x88   :  { %v65_v14 = vpop.permute.xlu0 %64 }
  0x89   :  { %v67_v15 = vadd.f32 %v65_v14, %v56_v0 }
  0x8b   :  { %v71_v27 = vadd.f32 %v69_v18, %v67_v15 }
  0x90   :  { %v146_v24 = vpop.permute.xlu0 %145 }
  0x91   :  { %v155_v26 = vadd.f32 %v153_v25, %v146_v24  ;;  %v154_v32 = vadd.f32 %v152_v31, %v146_v24 }
  0x93   :  { %v157_v28 = vmax.f32 %v155_v26, 0.0  ;;  %v156_v33 = vmax.f32 %v154_v32, 0.0 }
  0x95   :  { %160 = vadd.xlane.f32.xlu1 %v157_v28 }
  0xab   :  { %v62_v11 = vpop.xlane.xlu1 %61 }
  0xac   :  { %v85_v12 = vsub.f32 %v62_v11, %v75_v10  ;;  %v83_v13 = vsub.f32 %v62_v11, %v56_v0  ;;  %v104_v16 = vsub.f32 %v62_v11, %v67_v15  ;;  %v86_v22 = vsub.f32 %v62_v11, %v79_v20 }
  0xad   :  { %v105_v29 = vsub.f32 %v62_v11, %v71_v27  ;;  %v125_v50 = vmul.f32 %v124_v45, %v62_v11 }
  0xae   :  { %89 = vperm.xlu2 %206, %v85_v12   ;;  %100 = vperm.xlu0 %207, %v83_v13  }
  0xb6   :  { %208 = vset.pattern.permute.xlu2 %v323_v17  ;;  %211 = vset.pattern.permute.xlu0 %v323_v17 }
  0xb7   :  { %108 = vperm.xlu2 %208, %v104_v16   ;;  %118 = vperm.xlu0 %211, %v83_v13  }
  0xbf   :  { %209 = vset.pattern.permute.xlu2 %v322_v7  ;;  %212 = vset.pattern.permute.xlu0 %v135_v2 }
  0xc0   :  { %94 = vperm.xlu2 %209, %v86_v22  }
  0xc8   :  { %210 = vset.pattern.permute.xlu2 %v323_v17 }
  0xc9   :  { %113 = vperm.xlu2 %210, %v105_v29  }
  0xf2   :  { %158 = vadd.xlane.f32.xlu2 %v156_v33 }
 0x108   :  { %v90_v34 = vpop.permute.xlu2 %89  ;;  %v161_v53 = vpop.xlane.xlu1 %160 }
 0x109   :  { %v163_v56 = vmul.f32 0.0078125, %v161_v53 }
 0x10b   :  { %v168_v61 = vperm.slane %v163_v56, %v166_v55 }
 0x111   :  { %v109_v35 = vpop.permute.xlu2 %108 }
 0x11a   :  { %v95_v36 = vpop.permute.xlu2 %94 }
 0x11b   :  { %v97_v41 = vsel %vm84_vm1, %v90_v34, %v95_v36 }
 0x120   :  { %v101_v37 = vpop.permute.xlu0 %100 }
 0x121   :  { %v103_v44 = vsel %vm82_vm2, %v101_v37, %v97_v41 }
 0x122   :  { %v123_v49 = vmul.f32 %v122_v42, %v103_v44 }
 0x123   :  { %v114_v40 = vpop.permute.xlu2 %113 }
 0x124   :  { %v116_v46 = vsel %vm84_vm1, %v109_v35, %v114_v40  ;;  %v126_v52 = vadd.f32 %v125_v50, %v123_v49 }
 0x129   :  { %v119_v43 = vpop.permute.xlu0 %118 }
 0x12a   :  { %v121_v48 = vsel %vm82_vm2, %v119_v43, %v116_v46 }
 0x12b   :  { %v128_v51 = vmul.f32 %v127_v47, %v121_v48 }
 0x12d   :  { %v129_v54 = vadd.f32 %v128_v51, %v126_v52 }
 0x12f   :  { %v130_v58 = vmul.f32 0.0078125, %v129_v54 }
 0x131   :  { %v132_v63 = vadd.f32 %v131_v57, %v130_v58 }
 0x165   :  { %v159_v59 = vpop.xlane.xlu2 %158 }
 0x166   :  { %v162_v60 = vmul.f32 0.0078125, %v159_v59 }
 0x168   :  { %v167_v62 = vperm.slane %v162_v60, %v166_v55 }
 0x16a   :  { %v170_v0 = vsel %vm169_vm3, %v168_v61, %v167_v62 }
 0x16b   :  { %v173_v1 = vsel %vm172_vm4, %v132_v63, %v170_v0 }
 0x16c   :  { %175 = vst.msk [vmem:[#allocation8] sm:$0x3] %vm174_vm5, %v173_v1 }
 0x16d   :  { %186 = dma.vmem_to_hbm [thread:$0]  %s182_s29, 32, %s184_s5, [#allocation4]  }
 0x16e   :  { %313 = dma.done.wait [#allocation4], 32  }
 0x16f   :  { %314 = vsyncadd [#allocation4], 4294967264 }
 0x170   :  { %191 = vsyncpa [#allocation3], 1 }
 0x171   :  { %192 = vsyncpa [#allocation6], 1 }
 0x172   :  { %193 = vsyncpa [#allocation4], 1 }

</bundles_post_ra>
